<compile_context>
chip_gen: v6e
topology: v6e:2x2x1
jax: 0.10.0
libtpu: 0.0.40
codegen_flags: <defaults>
</compile_context>

<pallas_src>
import jax
import jax.numpy as jnp
from jax.experimental import pallas as pl
from jax.experimental.pallas import tpu as pltpu

COORD_DIM = 7
INPUT_DIM = 4 * COORD_DIM       # 28
AUG_DIM = INPUT_DIM + 1         # 29 (extra contraction row carries the ||x||^2 term)
OUTPUT_DIM = COORD_DIM          # 7
NUM_CENTERS = 2048


def rbfnn_kernel(x_ref, centers_aug_ref, bias_ref, w_ref, out_ref):
    # exponent = x_aug @ centers_aug + bias
    #          = (x . c)/w^2 - ||x||^2/(2w^2) - ||c||^2/(2w^2)
    #          = -||x - c||^2 / (2 w^2)
    s = jnp.dot(x_ref[...], centers_aug_ref[...],
                preferred_element_type=jnp.float32)              # (1, 2048) MXU
    rbf = jnp.exp(s + bias_ref[...])                             # (1, 2048) EUP
    out_ref[...] = jnp.dot(rbf, w_ref[...],
                           preferred_element_type=jnp.float32)   # (1, 7)   MXU


def precompute_rbfnn_params(centers, widths, w):
    """One-time, grid-invariant preprocessing (call once, reuse every tick)."""
    centers = centers.astype(jnp.float32)                        # (2048, 28)
    widths = widths.astype(jnp.float32)                          # (2048,)
    inv_w2 = 1.0 / (widths * widths)                             # (2048,)
    inv_two_w2 = 0.5 * inv_w2                                    # (2048,)
    centers_scaled = centers.T * inv_w2[None, :]                 # (28, 2048)
    centers_aug = jnp.concatenate(
        [centers_scaled, -inv_two_w2[None, :]], axis=0)          # (29, 2048)
    c2 = jnp.sum(centers * centers, axis=1)                      # (2048,)
    bias = (-c2 * inv_two_w2)[None, :]                           # (1, 2048)
    return centers_aug, bias, w.astype(jnp.float32)


@jax.jit
def rbfnn_forward(q, dq, e, E, centers_aug, bias, w):
    # Per-call work only: concat, ||x||^2, single fused kernel.
    x = jnp.concatenate([q, dq, e, E]).astype(jnp.float32)       # (28,)
    x_aug = jnp.concatenate([x, jnp.sum(x * x)[None]])[None, :]  # (1, 29) lane-major row

    return pl.pallas_call(
        rbfnn_kernel,
        out_shape=jax.ShapeDtypeStruct((1, OUTPUT_DIM), jnp.float32),
        grid_spec=pltpu.PrefetchScalarGridSpec(
            num_scalar_prefetch=0,
            grid=(1,),  # everything fits in VMEM -> one coarse step
            in_specs=[
                pl.BlockSpec((1, AUG_DIM), lambda i: (0, 0)),               # x_aug
                pl.BlockSpec((AUG_DIM, NUM_CENTERS), lambda i: (0, 0)),     # centers_aug
                pl.BlockSpec((1, NUM_CENTERS), lambda i: (0, 0)),           # bias
                pl.BlockSpec((NUM_CENTERS, OUTPUT_DIM), lambda i: (0, 0)),  # w
            ],
            out_specs=pl.BlockSpec((1, OUTPUT_DIM), lambda i: (0, 0)),
        ),
        compiler_params=pltpu.CompilerParams(
            dimension_semantics=("arbitrary",)),
    )(x_aug, centers_aug, bias, w)


def rbfnn_reference(q, dq, e, E, centers, widths, w):
    # Pure-JAX mirror of the PyTorch forward().
    x = jnp.concatenate([q, dq, e, E])[None, :]                          # (1, 28)
    d2 = jnp.sum((x[:, None, :] - centers[None, :, :]) ** 2, axis=2)     # (1, 2048)
    rbf = jnp.exp(-d2 / (2.0 * widths ** 2))
    return rbf @ w                                                       # (1, 7)


# TODO(synk): update_RBFNN (the online weight/mu update rule) is a stateful
# training-time side effect, not part of forward(); intentionally not ported.


if __name__ == "__main__":
    key = jax.random.PRNGKey(0)
    kc, kw, kq, kdq, ke, kE = jax.random.split(key, 6)

    # Module-consistent shapes: coord_dim=7 -> input_dim=28, 2048 centers, widths=3.
    centers = jax.random.normal(kc, (NUM_CENTERS, INPUT_DIM), dtype=jnp.float32)
    widths = jnp.full((NUM_CENTERS,), 3.0, dtype=jnp.float32)
    w = jax.random.normal(kw, (NUM_CENTERS, OUTPUT_DIM), dtype=jnp.float32)

    q = 0.5 * jax.random.normal(kq, (COORD_DIM,), dtype=jnp.float32)
    dq = 0.5 * jax.random.normal(kdq, (COORD_DIM,), dtype=jnp.float32)
    e = 0.5 * jax.random.normal(ke, (COORD_DIM,), dtype=jnp.float32)
    E = 0.5 * jax.random.normal(kE, (COORD_DIM,), dtype=jnp.float32)

    # One-time init (kept out of the per-call path).
    centers_aug, bias, w_f32 = precompute_rbfnn_params(centers, widths, w)
    centers_aug, bias, w_f32 = jax.block_until_ready((centers_aug, bias, w_f32))

    out = rbfnn_forward(q, dq, e, E, centers_aug, bias, w_f32)
    out = jax.block_until_ready(out)

    ref = rbfnn_reference(q, dq, e, E, centers, widths, w)
    assert out.shape == (1, OUTPUT_DIM)
    assert jnp.allclose(out, ref, rtol=1e-3, atol=1e-3), (out, ref)

    print("KERNEL_OK")
</pallas_src>

<mosaic_0001>
module attributes {stable_mosaic.version = 11 : i64} {
  func.func @rbfnn_kernel(%arg0: i32, %arg1: memref<1x29xf32, #tpu.memory_space<vmem>>, %arg2: memref<29x2048xf32, #tpu.memory_space<vmem>>, %arg3: memref<1x2048xf32, #tpu.memory_space<vmem>>, %arg4: memref<2048x7xf32, #tpu.memory_space<vmem>>, %arg5: memref<1x7xf32, #tpu.memory_space<vmem>>) attributes {dimension_semantics = [#tpu.dimension_semantics<arbitrary>], iteration_bounds = array<i64: 1>, scalar_prefetch = 0 : i64, scratch_operands = 0 : i64, tpu.core_type = #tpu.core_type<tc>, window_params = [{pipeline_mode = #tpu.pipeline_mode<synchronous>, transform_indices = @transform_0, window_bounds = array<i64: 1, 29>}, {pipeline_mode = #tpu.pipeline_mode<synchronous>, transform_indices = @transform_1, window_bounds = array<i64: 29, 2048>}, {pipeline_mode = #tpu.pipeline_mode<synchronous>, transform_indices = @transform_2, window_bounds = array<i64: 1, 2048>}, {pipeline_mode = #tpu.pipeline_mode<synchronous>, transform_indices = @transform_3, window_bounds = array<i64: 2048, 7>}, {pipeline_mode = #tpu.pipeline_mode<synchronous>, transform_indices = @transform_4, window_bounds = array<i64: 1, 7>}]} {
    %c0 = arith.constant 0 : index
    %c0_0 = arith.constant 0 : index
    %0 = vector.load %arg1[%c0, %c0_0] : memref<1x29xf32, #tpu.memory_space<vmem>>, vector<1x29xf32>
    %c0_1 = arith.constant 0 : index
    %c0_2 = arith.constant 0 : index
    %1 = vector.load %arg2[%c0_1, %c0_2] : memref<29x2048xf32, #tpu.memory_space<vmem>>, vector<29x2048xf32>
    %cst = arith.constant dense<0.000000e+00> : vector<1x2048xf32>
    %2 = tpu.matmul %0, %1, %cst {dimension_numbers = #tpu.dot_dimension_numbers<[1], [0], [0], [1], [0, 0, 1, 1], [], []>} : vector<1x29xf32>, vector<29x2048xf32>, vector<1x2048xf32> -> vector<1x2048xf32>
    %c0_3 = arith.constant 0 : index
    %c0_4 = arith.constant 0 : index
    %3 = vector.load %arg3[%c0_3, %c0_4] : memref<1x2048xf32, #tpu.memory_space<vmem>>, vector<1x2048xf32>
    %4 = arith.addf %2, %3 : vector<1x2048xf32>
    %5 = math.exp %4 : vector<1x2048xf32>
    %c0_5 = arith.constant 0 : index
    %c0_6 = arith.constant 0 : index
    %6 = vector.load %arg4[%c0_5, %c0_6] : memref<2048x7xf32, #tpu.memory_space<vmem>>, vector<2048x7xf32>
    %cst_7 = arith.constant dense<0.000000e+00> : vector<1x7xf32>
    %7 = tpu.matmul %5, %6, %cst_7 {dimension_numbers = #tpu.dot_dimension_numbers<[1], [0], [0], [1], [0, 0, 1, 1], [], []>} : vector<1x2048xf32>, vector<2048x7xf32>, vector<1x7xf32> -> vector<1x7xf32>
    %c0_8 = arith.constant 0 : index
    %c0_9 = arith.constant 0 : index
    %8 = vector.load %arg5[%c0_8, %c0_9] : memref<1x7xf32, #tpu.memory_space<vmem>>, vector<1x7xf32>
    tpu.vector_store %arg5[%c0_8, %c0_9], %7 {strides = array<i32>} : memref<1x7xf32, #tpu.memory_space<vmem>>, vector<1x7xf32>,
    return
  }
  func.func @transform_0(%arg0: i32) -> (i32, i32) {
    %c0_i32 = arith.constant 0 : i32
    %c0_i32_0 = arith.constant 0 : i32
    %c0_i32_1 = arith.constant 0 : i32
    return %c0_i32, %c0_i32_0 : i32, i32
  }
  func.func @transform_1(%arg0: i32) -> (i32, i32) {
    %c0_i32 = arith.constant 0 : i32
    %c0_i32_0 = arith.constant 0 : i32
    %c0_i32_1 = arith.constant 0 : i32
    return %c0_i32, %c0_i32_0 : i32, i32
  }
  func.func @transform_2(%arg0: i32) -> (i32, i32) {
    %c0_i32 = arith.constant 0 : i32
    %c0_i32_0 = arith.constant 0 : i32
    %c0_i32_1 = arith.constant 0 : i32
    return %c0_i32, %c0_i32_0 : i32, i32
  }
  func.func @transform_3(%arg0: i32) -> (i32, i32) {
    %c0_i32 = arith.constant 0 : i32
    %c0_i32_0 = arith.constant 0 : i32
    %c0_i32_1 = arith.constant 0 : i32
    return %c0_i32, %c0_i32_0 : i32, i32
  }
  func.func @transform_4(%arg0: i32) -> (i32, i32) {
    %c0_i32 = arith.constant 0 : i32
    %c0_i32_0 = arith.constant 0 : i32
    %c0_i32_1 = arith.constant 0 : i32
    return %c0_i32, %c0_i32_0 : i32, i32
  }
}

</mosaic_0001>

<bundles_post_ra>
// kernel: rbfnn_forward.1
= control target key start
LH: loop header
LB: loop body
LE: loop exit
PB: predicated region body
PF: predicated region fallthrough
CT: control target
= control target key end

     0   :  { %vm171_vm0 = vcmask 1044480   ;;  %vm167_vm1 = vcmask 236544   ;;  %v2012_v17 = vmov 0.0   ;;  %s3115_s0 = inlined_call_operand.vmem [shape: f32[1,29], index: 0, kind: input, shape index: {}]   ;;  %s3116_s1 = inlined_call_operand.vmem [shape: f32[29,2048], index: 1, kind: input, shape index: {}]   ;;  %s3117_s2 = inlined_call_operand.vmem [shape: f32[1,2048], index: 2, kind: input, shape index: {}]   ;;  %s3118_s3 = inlined_call_operand.vmem [shape: f32[2048,7], index: 3, kind: input, shape index: {}]   ;;  %s3119_s4 = inlined_call_operand.hbm [shape: f32[1,7], index: 4, kind: output, shape index: {}]  }
   0x1   :  { %v68_v0 = vld [vmem:[%s3116_s1 + $0x188] sm:$0x1f]  ;;  %v70_v1 = vld [vmem:[%s3116_s1 + $0x198] sm:$0x1f]  ;;  %v67_v3 = vld [vmem:[%s3116_s1 + $0x180] sm:$0x1f]  ;;  %284 = vmatprep.mubr.f32.mxu0 %v2012_v17  ;;  %355 = vmatprep.mubr.f32.mxu1 %v2012_v17 }
   0x2   :  { %v52_v2 = vld [vmem:[%s3116_s1 + $0x108] sm:$0xff]  ;;  %1652 = vmatprep.subr.msk.mxu0 %vm171_vm0, %v68_v0  ;;  %1655 = vmatprep.subr.msk.mxu1 %vm171_vm0, %v70_v1  ;;  %v69_v4 = vld [vmem:[%s3116_s1 + $0x190] sm:$0x1f]  ;;  %v54_v5 = vld [vmem:[%s3116_s1 + $0x118] sm:$0xff] }
   0x3   :  { %1653 = vmatpush1.msk.msra.mxu0 %vm171_vm0, %v67_v3  ;;  %1656 = vmatpush1.msk.msra.mxu1 %vm171_vm0, %v69_v4  ;;  %v51_v6 = vld [vmem:[%s3116_s1 + $0x100] sm:$0xff]  ;;  %v53_v7 = vld [vmem:[%s3116_s1 + $0x110] sm:$0xff]  ;;  %v36_v8 = vld [vmem:[%s3116_s1 + $0x88] sm:$0xff] }
   0x4   :  { %246 = vmatprep.subr.mxu0 %v52_v2  ;;  %317 = vmatprep.subr.mxu1 %v54_v5  ;;  %v38_v9 = vld [vmem:[%s3116_s1 + $0x98] sm:$0xff]  ;;  %v35_v10 = vld [vmem:[%s3116_s1 + $0x80] sm:$0xff]  ;;  %v37_v11 = vld [vmem:[%s3116_s1 + $0x90] sm:$0xff] }
   0x5   :  { %247 = vmatpush1.msra.mxu0 %v51_v6  ;;  %318 = vmatpush1.msra.mxu1 %v53_v7  ;;  %v20_v12 = vld [vmem:[%s3116_s1 + $0x8] sm:$0xff]  ;;  %v22_v13 = vld [vmem:[%s3116_s1 + $0x18] sm:$0xff]  ;;  %v19_v14 = vld [vmem:[%s3116_s1] sm:$0xff] }
   0x6   :  { %248 = vmatprep.subr.mxu0 %v36_v8  ;;  %319 = vmatprep.subr.mxu1 %v38_v9  ;;  %v21_v15 = vld [vmem:[%s3116_s1 + $0x10] sm:$0xff]  ;;  %v2094_v16 = vld [vmem:[%s3115_s0] sm:$0x1]  ;;  %v72_v18 = vld [vmem:[%s3116_s1 + $0x1a8] sm:$0x1f] }
   0x7   :  { %249 = vmatpush1.msra.mxu0 %v35_v10  ;;  %320 = vmatpush1.msra.mxu1 %v37_v11  ;;  %v74_v19 = vld [vmem:[%s3116_s1 + $0x1b8] sm:$0x1f]  ;;  %v71_v20 = vld [vmem:[%s3116_s1 + $0x1a0] sm:$0x1f]  ;;  %v73_v21 = vld [vmem:[%s3116_s1 + $0x1b0] sm:$0x1f] }
   0x8   :  { %250 = vmatprep.subr.mxu0 %v20_v12  ;;  %321 = vmatprep.subr.mxu1 %v22_v13  ;;  %v56_v22 = vld [vmem:[%s3116_s1 + $0x128] sm:$0xff]  ;;  %v58_v23 = vld [vmem:[%s3116_s1 + $0x138] sm:$0xff]  ;;  %v55_v24 = vld [vmem:[%s3116_s1 + $0x120] sm:$0xff] }
   0x9   :  { %251 = vmatpush1.msra.mxu0 %v19_v14  ;;  %322 = vmatpush1.msra.mxu1 %v21_v15  ;;  %v57_v25 = vld [vmem:[%s3116_s1 + $0x130] sm:$0xff]  ;;  %v40_v26 = vld [vmem:[%s3116_s1 + $0xa8] sm:$0xff]  ;;  %v42_v27 = vld [vmem:[%s3116_s1 + $0xb8] sm:$0xff] }
   0xa   :  { %1654 = vmatmul.mubr.msk.f32.vlgmr.msra.gmra.mxu0 %vm167_vm1, %v2094_v16  ;;  %1657 = vmatmul.mubr.msk.f32.vlgmr.msra.gmra.mxu1 %vm167_vm1, %v2094_v16  ;;  %v39_v28 = vld [vmem:[%s3116_s1 + $0xa0] sm:$0xff]  ;;  %v41_v29 = vld [vmem:[%s3116_s1 + $0xb0] sm:$0xff]  ;;  %v24_v30 = vld [vmem:[%s3116_s1 + $0x28] sm:$0xff] }
   0xb   :  { %1658 = vmatprep.subr.msk.mxu0 %vm171_vm0, %v72_v18  ;;  %1661 = vmatprep.subr.msk.mxu1 %vm171_vm0, %v74_v19  ;;  %v23_v31 = vld [vmem:[%s3116_s1 + $0x20] sm:$0xff]  ;;  %v26_v32 = vld [vmem:[%s3116_s1 + $0x38] sm:$0xff]  ;;  %v25_v33 = vld [vmem:[%s3116_s1 + $0x30] sm:$0xff] }
   0xc   :  { %1659 = vmatpush1.msk.msra.mxu0 %vm171_vm0, %v71_v20  ;;  %1662 = vmatpush1.msk.msra.mxu1 %vm171_vm0, %v73_v21  ;;  %v76_v34 = vld [vmem:[%s3116_s1 + $0x1c8] sm:$0x1f]  ;;  %v75_v35 = vld [vmem:[%s3116_s1 + $0x1c0] sm:$0x1f]  ;;  %v78_v36 = vld [vmem:[%s3116_s1 + $0x1d8] sm:$0x1f] }
   0xd   :  { %388 = vmatprep.subr.mxu0 %v56_v22  ;;  %459 = vmatprep.subr.mxu1 %v58_v23  ;;  %v60_v37 = vld [vmem:[%s3116_s1 + $0x148] sm:$0xff]  ;;  %v77_v38 = vld [vmem:[%s3116_s1 + $0x1d0] sm:$0x1f]  ;;  %v59_v39 = vld [vmem:[%s3116_s1 + $0x140] sm:$0xff] }
   0xe   :  { %389 = vmatpush1.msra.mxu0 %v55_v24  ;;  %460 = vmatpush1.msra.mxu1 %v57_v25  ;;  %v62_v40 = vld [vmem:[%s3116_s1 + $0x158] sm:$0xff]  ;;  %v44_v41 = vld [vmem:[%s3116_s1 + $0xc8] sm:$0xff]  ;;  %v61_v42 = vld [vmem:[%s3116_s1 + $0x150] sm:$0xff] }
   0xf   :  { %390 = vmatprep.subr.mxu0 %v40_v26  ;;  %461 = vmatprep.subr.mxu1 %v42_v27  ;;  %v43_v43 = vld [vmem:[%s3116_s1 + $0xc0] sm:$0xff]  ;;  %v46_v44 = vld [vmem:[%s3116_s1 + $0xd8] sm:$0xff]  ;;  %v28_v45 = vld [vmem:[%s3116_s1 + $0x48] sm:$0xff] }
  0x10   :  { %391 = vmatpush1.msra.mxu0 %v39_v28  ;;  %462 = vmatpush1.msra.mxu1 %v41_v29  ;;  %v45_v46 = vld [vmem:[%s3116_s1 + $0xd0] sm:$0xff]  ;;  %v27_v47 = vld [vmem:[%s3116_s1 + $0x40] sm:$0xff]  ;;  %v30_v48 = vld [vmem:[%s3116_s1 + $0x58] sm:$0xff] }
  0x11   :  { %392 = vmatprep.subr.mxu0 %v24_v30  ;;  %426 = vmatprep.mubr.f32.mxu0 %v2012_v17  ;;  %v29_v49 = vld [vmem:[%s3116_s1 + $0x50] sm:$0xff]  ;;  %v80_v50 = vld [vmem:[%s3116_s1 + $0x1e8] sm:$0x1f]  ;;  %v79_v51 = vld [vmem:[%s3116_s1 + $0x1e0] sm:$0x1f] }
  0x12   :  { %393 = vmatpush1.msra.mxu0 %v23_v31  ;;  %463 = vmatprep.subr.mxu1 %v26_v32  ;;  %v64_v52 = vld [vmem:[%s3116_s1 + $0x168] sm:$0xff]  ;;  %v82_v53 = vld [vmem:[%s3116_s1 + $0x1f8] sm:$0x1f] }
  0x13   :  { %1660 = vmatmul.mubr.msk.f32.vlgmr.msra.gmra.mxu0 %vm167_vm1, %v2094_v16  ;;  %464 = vmatpush1.msra.mxu1 %v25_v33 }
  0x14   :  { %497 = vmatprep.mubr.f32.mxu1 %v2012_v17  ;;  %1664 = vmatprep.subr.msk.mxu0 %vm171_vm0, %v76_v34 }
  0x15   :  { %1663 = vmatmul.mubr.msk.f32.vlgmr.msra.gmra.mxu1 %vm167_vm1, %v2094_v16  ;;  %1665 = vmatpush1.msk.msra.mxu0 %vm171_vm0, %v75_v35 }
  0x16   :  { %1667 = vmatprep.subr.msk.mxu1 %vm171_vm0, %v78_v36  ;;  %530 = vmatprep.subr.mxu0 %v60_v37 }
  0x17   :  { %1668 = vmatpush1.msk.msra.mxu1 %vm171_vm0, %v77_v38  ;;  %531 = vmatpush1.msra.mxu0 %v59_v39 }
  0x18   :  { %601 = vmatprep.subr.mxu1 %v62_v40  ;;  %532 = vmatprep.subr.mxu0 %v44_v41 }
  0x19   :  { %602 = vmatpush1.msra.mxu1 %v61_v42  ;;  %533 = vmatpush1.msra.mxu0 %v43_v43 }
  0x1a   :  { %603 = vmatprep.subr.mxu1 %v46_v44  ;;  %534 = vmatprep.subr.mxu0 %v28_v45 }
  0x1b   :  { %604 = vmatpush1.msra.mxu1 %v45_v46  ;;  %535 = vmatpush1.msra.mxu0 %v27_v47 }
  0x1c   :  { %568 = vmatprep.mubr.f32.mxu0 %v2012_v17  ;;  %605 = vmatprep.subr.mxu1 %v30_v48 }
  0x1d   :  { %1666 = vmatmul.mubr.msk.f32.vlgmr.msra.gmra.mxu0 %vm167_vm1, %v2094_v16  ;;  %606 = vmatpush1.msra.mxu1 %v29_v49 }
  0x1e   :  { %9 = vsyncpa [#allocation3], 0  ;;  %639 = vmatprep.mubr.f32.mxu1 %v2012_v17  ;;  %1670 = vmatprep.subr.msk.mxu0 %vm171_vm0, %v80_v50  ;;  %v63_v54 = vld [vmem:[%s3116_s1 + $0x160] sm:$0xff]  ;;  %v81_v55 = vld [vmem:[%s3116_s1 + $0x1f0] sm:$0x1f]  ;;  %vm1636_vm2 = vcmask 49152  }
  0x1f   :  { %1669 = vmatmul.mubr.msk.f32.vlgmr.msra.gmra.mxu1 %vm167_vm1, %v2094_v16  ;;  %1671 = vmatpush1.msk.msra.mxu0 %vm171_vm0, %v79_v51  ;;  %v48_v56 = vld [vmem:[%s3116_s1 + $0xe8] sm:$0xff]  ;;  %v66_v57 = vld [vmem:[%s3116_s1 + $0x178] sm:$0xff]  ;;  %v47_v58 = vld [vmem:[%s3116_s1 + $0xe0] sm:$0xff] }
  0x20   :  { %672 = vmatprep.subr.mxu0 %v64_v52  ;;  %1673 = vmatprep.subr.msk.mxu1 %vm171_vm0, %v82_v53  ;;  %v65_v59 = vld [vmem:[%s3116_s1 + $0x170] sm:$0xff]  ;;  %v32_v60 = vld [vmem:[%s3116_s1 + $0x68] sm:$0xff]  ;;  %v50_v61 = vld [vmem:[%s3116_s1 + $0xf8] sm:$0xff] }
  0x21   :  { %673 = vmatpush1.msra.mxu0 %v63_v54  ;;  %1674 = vmatpush1.msk.msra.mxu1 %vm171_vm0, %v81_v55  ;;  %v31_v62 = vld [vmem:[%s3116_s1 + $0x60] sm:$0xff]  ;;  %v49_v63 = vld [vmem:[%s3116_s1 + $0xf0] sm:$0xff]  ;;  %v34_v0 = vld [vmem:[%s3116_s1 + $0x78] sm:$0xff] }
  0x22   :  { %674 = vmatprep.subr.mxu0 %v48_v56  ;;  %743 = vmatprep.subr.mxu1 %v66_v57  ;;  %v33_v1 = vld [vmem:[%s3116_s1 + $0x70] sm:$0xff]  ;;  %v851_v2 = vld [vmem:[%s3118_s3 + $0xf8] sm:$0xff]  ;;  %v849_v10 = vld [vmem:[%s3118_s3 + $0xe8] sm:$0xff] }
  0x23   :  { %675 = vmatpush1.msra.mxu0 %v47_v58  ;;  %744 = vmatpush1.msra.mxu1 %v65_v59  ;;  %v883_v3 = vld [vmem:[%s3118_s3 + $0x1f8] sm:$0xff]  ;;  %v850_v6 = vld [vmem:[%s3118_s3 + $0xf0] sm:$0xff]  ;;  %v881_v11 = vld [vmem:[%s3118_s3 + $0x1e8] sm:$0xff] }
  0x24   :  { %676 = vmatprep.subr.mxu0 %v32_v60  ;;  %745 = vmatprep.subr.mxu1 %v50_v61  ;;  %v835_v4 = vld [vmem:[%s3118_s3 + $0x78] sm:$0xff]  ;;  %v882_v7 = vld [vmem:[%s3118_s3 + $0x1f0] sm:$0xff]  ;;  %v833_v12 = vld [vmem:[%s3118_s3 + $0x68] sm:$0xff] }
  0x25   :  { %677 = vmatpush1.msra.mxu0 %v31_v62  ;;  %710 = vmatprep.mubr.f32.mxu0 %v2012_v17  ;;  %v867_v5 = vld [vmem:[%s3118_s3 + $0x178] sm:$0xff]  ;;  %v834_v8 = vld [vmem:[%s3118_s3 + $0x70] sm:$0xff]  ;;  %v865_v13 = vld [vmem:[%s3118_s3 + $0x168] sm:$0xff] }
  0x26   :  { %746 = vmatpush1.msra.mxu1 %v49_v63  ;;  %1672 = vmatmul.mubr.msk.f32.vlgmr.msra.gmra.mxu0 %vm167_vm1, %v2094_v16  ;;  %v866_v9 = vld [vmem:[%s3118_s3 + $0x170] sm:$0xff]  ;;  %v848_v14 = vld [vmem:[%s3118_s3 + $0xe0] sm:$0xff]  ;;  %v847_v18 = vld [vmem:[%s3118_s3 + $0xd8] sm:$0xff] }
  0x27   :  { %747 = vmatprep.subr.mxu1 %v34_v0  ;;  %781 = vmatprep.mubr.f32.mxu1 %v2012_v17  ;;  %v880_v15 = vld [vmem:[%s3118_s3 + $0x1e0] sm:$0xff]  ;;  %v879_v19 = vld [vmem:[%s3118_s3 + $0x1d8] sm:$0xff]  ;;  %v846_v22 = vld [vmem:[%s3118_s3 + $0xd0] sm:$0xff] }
  0x28   :  { %748 = vmatpush1.msra.mxu1 %v33_v1  ;;  %1676 = vmatprep.subr.mxu0 %v851_v2  ;;  %v864_v17 = vld [vmem:[%s3118_s3 + $0x160] sm:$0xff]  ;;  %v831_v20 = vld [vmem:[%s3118_s3 + $0x58] sm:$0xff]  ;;  %v878_v23 = vld [vmem:[%s3118_s3 + $0x1d0] sm:$0xff] }
  0x29   :  { %1675 = vmatmul.mubr.msk.f32.vlgmr.msra.gmra.mxu1 %vm167_vm1, %v2094_v16  ;;  %1711 = vmatprep.subr.mxu1 %v883_v3  ;;  %v832_v16 = vld [vmem:[%s3118_s3 + $0x60] sm:$0xff]  ;;  %v863_v21 = vld [vmem:[%s3118_s3 + $0x158] sm:$0xff]  ;;  %v830_v24 = vld [vmem:[%s3118_s3 + $0x50] sm:$0xff] }
  0x2a   :  { %1677 = vmatpush3.msra.mxu0 %v835_v4  ;;  %1712 = vmatpush3.msra.mxu1 %v867_v5  ;;  %v862_v25 = vld [vmem:[%s3118_s3 + $0x150] sm:$0xff]  ;;  %v845_v26 = vld [vmem:[%s3118_s3 + $0xc8] sm:$0xff]  ;;  %v844_v30 = vld [vmem:[%s3118_s3 + $0xc0] sm:$0xff]  ;;  %v87_v4 = vlaneseq }
  0x2b   :  { %1678 = vmatprep.subr.mxu0 %v850_v6  ;;  %1713 = vmatprep.subr.mxu1 %v882_v7  ;;  %v877_v27 = vld [vmem:[%s3118_s3 + $0x1c8] sm:$0xff]  ;;  %v876_v31 = vld [vmem:[%s3118_s3 + $0x1c0] sm:$0xff]  ;;  %v843_v34 = vld [vmem:[%s3118_s3 + $0xb8] sm:$0xff] }
  0x2c   :  { %1679 = vmatpush3.msra.mxu0 %v834_v8  ;;  %1714 = vmatpush3.msra.mxu1 %v866_v9  ;;  %v829_v28 = vld [vmem:[%s3118_s3 + $0x48] sm:$0xff]  ;;  %v828_v32 = vld [vmem:[%s3118_s3 + $0x40] sm:$0xff]  ;;  %v875_v35 = vld [vmem:[%s3118_s3 + $0x1b8] sm:$0xff]  ;;  %v2474_v5 = vshrl.u32 %v87_v4, 7 }
  0x2d   :  { %1680 = vmatprep.subr.mxu0 %v849_v10  ;;  %1715 = vmatprep.subr.mxu1 %v881_v11  ;;  %v861_v29 = vld [vmem:[%s3118_s3 + $0x148] sm:$0xff]  ;;  %v860_v33 = vld [vmem:[%s3118_s3 + $0x140] sm:$0xff]  ;;  %v827_v36 = vld [vmem:[%s3118_s3 + $0x38] sm:$0xff] }
  0x2e   :  { %1681 = vmatpush3.msra.mxu0 %v833_v12  ;;  %1716 = vmatpush3.msra.mxu1 %v865_v13  ;;  %v859_v37 = vld [vmem:[%s3118_s3 + $0x138] sm:$0xff]  ;;  %v842_v38 = vld [vmem:[%s3118_s3 + $0xb0] sm:$0xff]  ;;  %v841_v42 = vld [vmem:[%s3118_s3 + $0xa8] sm:$0xff]  ;;  %v89_v6 = vsub.s32 0, %v2474_v5  ;;  %v97_v7 = vsub.s32 2, %v2474_v5  ;;  %v93_v9 = vsub.s32 1, %v2474_v5 }
  0x2f   :  { %1682 = vmatprep.subr.mxu0 %v848_v14  ;;  %1717 = vmatprep.subr.mxu1 %v880_v15  ;;  %v874_v39 = vld [vmem:[%s3118_s3 + $0x1b0] sm:$0xff]  ;;  %v873_v43 = vld [vmem:[%s3118_s3 + $0x1a8] sm:$0xff]  ;;  %v840_v46 = vld [vmem:[%s3118_s3 + $0xa0] sm:$0xff]  ;;  %v101_v10 = vsub.s32 3, %v2474_v5 }
  0x30   :  { %1683 = vmatpush3.msra.mxu0 %v832_v16  ;;  %1718 = vmatpush3.msra.mxu1 %v864_v17  ;;  %v826_v40 = vld [vmem:[%s3118_s3 + $0x30] sm:$0xff]  ;;  %v825_v44 = vld [vmem:[%s3118_s3 + $0x28] sm:$0xff]  ;;  %v872_v47 = vld [vmem:[%s3118_s3 + $0x1a0] sm:$0xff] }
  0x31   :  { %1684 = vmatprep.subr.mxu0 %v847_v18  ;;  %1719 = vmatprep.subr.mxu1 %v879_v19  ;;  %v858_v41 = vld [vmem:[%s3118_s3 + $0x130] sm:$0xff]  ;;  %v857_v45 = vld [vmem:[%s3118_s3 + $0x128] sm:$0xff]  ;;  %v824_v48 = vld [vmem:[%s3118_s3 + $0x20] sm:$0xff] }
  0x32   :  { %1685 = vmatpush3.msra.mxu0 %v831_v20  ;;  %1720 = vmatpush3.msra.mxu1 %v863_v21  ;;  %v856_v49 = vld [vmem:[%s3118_s3 + $0x120] sm:$0xff]  ;;  %v839_v50 = vld [vmem:[%s3118_s3 + $0x98] sm:$0xff]  ;;  %v838_v54 = vld [vmem:[%s3118_s3 + $0x90] sm:$0xff] }
  0x33   :  { %1686 = vmatprep.subr.mxu0 %v846_v22  ;;  %1721 = vmatprep.subr.mxu1 %v878_v23  ;;  %v871_v51 = vld [vmem:[%s3118_s3 + $0x198] sm:$0xff]  ;;  %v870_v55 = vld [vmem:[%s3118_s3 + $0x190] sm:$0xff]  ;;  %v837_v58 = vld [vmem:[%s3118_s3 + $0x88] sm:$0xff] }
  0x34   :  { %1687 = vmatpush3.msra.mxu0 %v830_v24  ;;  %1722 = vmatpush3.msra.mxu1 %v862_v25  ;;  %v823_v52 = vld [vmem:[%s3118_s3 + $0x18] sm:$0xff]  ;;  %v822_v56 = vld [vmem:[%s3118_s3 + $0x10] sm:$0xff]  ;;  %v869_v59 = vld [vmem:[%s3118_s3 + $0x188] sm:$0xff] }
  0x35   :  { %1688 = vmatprep.subr.mxu0 %v845_v26  ;;  %1723 = vmatprep.subr.mxu1 %v877_v27  ;;  %v855_v53 = vld [vmem:[%s3118_s3 + $0x118] sm:$0xff]  ;;  %v854_v57 = vld [vmem:[%s3118_s3 + $0x110] sm:$0xff]  ;;  %v821_v60 = vld [vmem:[%s3118_s3 + $0x8] sm:$0xff] }
  0x36   :  { %1689 = vmatpush3.msra.mxu0 %v829_v28  ;;  %1724 = vmatpush3.msra.mxu1 %v861_v29  ;;  %v853_v61 = vld [vmem:[%s3118_s3 + $0x108] sm:$0xff]  ;;  %v836_v62 = vld [vmem:[%s3118_s3 + $0x80] sm:$0xff]  ;;  %v915_v2 = vld [vmem:[%s3118_s3 + $0x2f8] sm:$0xff] }
  0x37   :  { %1690 = vmatprep.subr.mxu0 %v844_v30  ;;  %1725 = vmatprep.subr.mxu1 %v876_v31  ;;  %v868_v63 = vld [vmem:[%s3118_s3 + $0x180] sm:$0xff]  ;;  %v947_v3 = vld [vmem:[%s3118_s3 + $0x3f8] sm:$0xff] }
  0x38   :  { %1691 = vmatpush3.msra.mxu0 %v828_v32  ;;  %1726 = vmatpush3.msra.mxu1 %v860_v33  ;;  %v820_v0 = vld [vmem:[%s3118_s3] sm:$0xff]  ;;  %v899_v30 = vld [vmem:[%s3118_s3 + $0x278] sm:$0xff]  ;;  %v914_v33 = vld [vmem:[%s3118_s3 + $0x2f0] sm:$0xff] }
  0x39   :  { %1692 = vmatprep.subr.mxu0 %v843_v34  ;;  %1727 = vmatprep.subr.mxu1 %v875_v35  ;;  %v852_v1 = vld [vmem:[%s3118_s3 + $0x100] sm:$0xff]  ;;  %v931_v32 = vld [vmem:[%s3118_s3 + $0x378] sm:$0xff]  ;;  %v109_v34 = vsub.s32 5, %v2474_v5  ;;  %v946_v35 = vld [vmem:[%s3118_s3 + $0x3f0] sm:$0xff] }
  0x3a   :  { %1693 = vmatpush3.msra.mxu0 %v827_v36  ;;  %1728 = vmatpush3.msra.mxu1 %v859_v37  ;;  %v2481_v8 = vld [vmem:[%s3117_s2] sm:$0xff]  ;;  %v898_v36 = vld [vmem:[%s3118_s3 + $0x270] sm:$0xff] }
  0x3b   :  { %1694 = vmatprep.subr.mxu0 %v842_v38  ;;  %1729 = vmatprep.subr.mxu1 %v874_v39  ;;  %v90_v11 = vrot.slane %v2481_v8, %v89_v6  ;;  %v98_v12 = vrot.slane %v2481_v8, %v97_v7  ;;  %v94_v13 = vrot.slane %v2481_v8, %v93_v9  ;;  %v930_v38 = vld [vmem:[%s3118_s3 + $0x370] sm:$0xff]  ;;  %v913_v39 = vld [vmem:[%s3118_s3 + $0x2e8] sm:$0xff] }
  0x3c   :  { %1695 = vmatpush3.msra.mxu0 %v826_v40  ;;  %1730 = vmatpush3.msra.mxu1 %v858_v41  ;;  %v102_v14 = vrot.slane %v2481_v8, %v101_v10  ;;  %v117_v40 = vsub.s32 7, %v2474_v5  ;;  %v945_v41 = vld [vmem:[%s3118_s3 + $0x3e8] sm:$0xff] }
  0x3d   :  { %1696 = vmatprep.subr.mxu0 %v841_v42  ;;  %1731 = vmatprep.subr.mxu1 %v873_v43  ;;  %v897_v42 = vld [vmem:[%s3118_s3 + $0x268] sm:$0xff]  ;;  %v113_v43 = vsub.s32 6, %v2474_v5 }
  0x3e   :  { %1697 = vmatpush3.msra.mxu0 %v825_v44  ;;  %1732 = vmatpush3.msra.mxu1 %v857_v45  ;;  %v929_v45 = vld [vmem:[%s3118_s3 + $0x368] sm:$0xff] }
  0x3f   :  { %1698 = vmatprep.subr.mxu0 %v840_v46  ;;  %1733 = vmatprep.subr.mxu1 %v872_v47  ;;  %v912_v46 = vld [vmem:[%s3118_s3 + $0x2e0] sm:$0xff]  ;;  %v105_v47 = vsub.s32 4, %v2474_v5  ;;  %v1022_v5 = vld [vmem:[%s3118_s3 + $0x650] sm:$0xff] }
  0x40   :  { %1699 = vmatpush3.msra.mxu0 %v824_v48  ;;  %1734 = vmatpush3.msra.mxu1 %v856_v49  ;;  %v110_v48 = vrot.slane %v2481_v8, %v109_v34  ;;  %v944_v49 = vld [vmem:[%s3118_s3 + $0x3e0] sm:$0xff] }
  0x41   :  { %1700 = vmatprep.subr.mxu0 %v839_v50  ;;  %1735 = vmatprep.subr.mxu1 %v871_v51  ;;  %v896_v50 = vld [vmem:[%s3118_s3 + $0x260] sm:$0xff] }
  0x42   :  { %1701 = vmatpush3.msra.mxu0 %v823_v52  ;;  %1736 = vmatpush3.msra.mxu1 %v855_v53  ;;  %v928_v52 = vld [vmem:[%s3118_s3 + $0x360] sm:$0xff]  ;;  %v911_v53 = vld [vmem:[%s3118_s3 + $0x2d8] sm:$0xff] }
  0x43   :  { %1702 = vmatprep.subr.mxu0 %v838_v54  ;;  %1737 = vmatprep.subr.mxu1 %v870_v55  ;;  %v118_v54 = vrot.slane %v2481_v8, %v117_v40  ;;  %v943_v55 = vld [vmem:[%s3118_s3 + $0x3d8] sm:$0xff] }
  0x44   :  { %1703 = vmatpush3.msra.mxu0 %v822_v56  ;;  %1738 = vmatpush3.msra.mxu1 %v854_v57  ;;  %v895_v56 = vld [vmem:[%s3118_s3 + $0x258] sm:$0xff]  ;;  %v114_v57 = vrot.slane %v2481_v8, %v113_v43 }
  0x45   :  { %1704 = vmatprep.subr.mxu0 %v837_v58  ;;  %1739 = vmatprep.subr.mxu1 %v869_v59  ;;  %v106_v59 = vrot.slane %v2481_v8, %v105_v47  ;;  %v941_v8 = vld [vmem:[%s3118_s3 + $0x3c8] sm:$0xff] }
  0x46   :  { %1705 = vmatpush3.msra.mxu0 %v821_v60  ;;  %1740 = vmatpush3.msra.mxu1 %v853_v61  ;;  %v927_v60 = vld [vmem:[%s3118_s3 + $0x358] sm:$0xff]  ;;  %v910_v61 = vld [vmem:[%s3118_s3 + $0x2d0] sm:$0xff] }
  0x47   :  { %1706 = vmatprep.subr.mxu0 %v836_v62  ;;  %1741 = vmatprep.subr.mxu1 %v868_v63  ;;  %v942_v63 = vld [vmem:[%s3118_s3 + $0x3d0] sm:$0xff] }
  0x48   :  { %1707 = vmatpush3.msra.mxu0 %v820_v0  ;;  %1742 = vmatpush3.msra.mxu1 %v852_v1  ;;  %v894_v0 = vld [vmem:[%s3118_s3 + $0x250] sm:$0xff] }
  0x49   :  { %1746 = vmatprep.subr.mxu0 %v915_v2  ;;  %1781 = vmatprep.subr.mxu1 %v947_v3  ;;  %v926_v1 = vld [vmem:[%s3118_s3 + $0x350] sm:$0xff]  ;;  %v909_v3 = vld [vmem:[%s3118_s3 + $0x2c8] sm:$0xff] }
  0xca   :  { %v286_v15 = vpop.f32.mrf.mxu0  ;;  %v357_v16 = vpop.f32.mrf.mxu1 }
  0xcb   :  { %v287_v17 = vadd.f32 %v286_v15, %v90_v11  ;;  %v358_v18 = vadd.f32 %v357_v16, %v98_v12  ;;  %v893_v11 = vld [vmem:[%s3118_s3 + $0x248] sm:$0xff]  ;;  %v908_v15 = vld [vmem:[%s3118_s3 + $0x2c0] sm:$0xff] }
  0xcc   :  { %v288_v19 = vpop.f32.mrf.mxu0  ;;  %v359_v20 = vpop.f32.mrf.mxu1  ;;  %v940_v16 = vld [vmem:[%s3118_s3 + $0x3c0] sm:$0xff] }
  0xcd   :  { %v788_v21 = vmul.f32 1.442695, %v287_v17  ;;  %v792_v22 = vmul.f32 1.442695, %v358_v18  ;;  %v289_v23 = vadd.f32 %v288_v19, %v94_v13  ;;  %v360_v24 = vadd.f32 %v359_v20, %v102_v14  ;;  %v925_v14 = vld [vmem:[%s3118_s3 + $0x348] sm:$0xff]  ;;  %v892_v17 = vld [vmem:[%s3118_s3 + $0x240] sm:$0xff] }
  0xce   :  { %v924_v19 = vld [vmem:[%s3118_s3 + $0x340] sm:$0xff]  ;;  %v907_v20 = vld [vmem:[%s3118_s3 + $0x2b8] sm:$0xff] }
  0xcf   :  { %1958 = vpow2.f32 %v788_v21  ;;  %v790_v25 = vmul.f32 1.442695, %v289_v23  ;;  %v794_v26 = vmul.f32 1.442695, %v360_v24  ;;  %v891_v23 = vld [vmem:[%s3118_s3 + $0x238] sm:$0xff] }
  0xd0   :  { %1960 = vpow2.f32 %v792_v22  ;;  %v939_v22 = vld [vmem:[%s3118_s3 + $0x3b8] sm:$0xff] }
  0xd1   :  { %1962 = vpow2.f32 %v790_v25  ;;  %v923_v25 = vld [vmem:[%s3118_s3 + $0x338] sm:$0xff] }
  0xd2   :  { %1964 = vpow2.f32 %v794_v26  ;;  %v906_v26 = vld [vmem:[%s3118_s3 + $0x2b0] sm:$0xff] }
  0xd3   :  { %v428_v37 = vpop.f32.mrf.mxu0 }
  0xd4   :  { %v429_v12 = vadd.f32 %v428_v37, %v106_v59  ;;  %v888_v37 = vld [vmem:[%s3118_s3 + $0x220] sm:$0xff] }
  0xd5   :  { %v499_v44 = vpop.f32.mrf.mxu1  ;;  %v430_v51 = vpop.f32.mrf.mxu0 }
  0xd6   :  { %v431_v62 = vadd.f32 %v430_v51, %v110_v48  ;;  %v500_v4 = vadd.f32 %v499_v44, %v114_v57  ;;  %v796_v24 = vmul.f32 1.442695, %v429_v12  ;;  %v919_v44 = vld [vmem:[%s3118_s3 + $0x318] sm:$0xff]  ;;  %v886_v48 = vld [vmem:[%s3118_s3 + $0x210] sm:$0xff]  ;;  %v933_v51 = vld [vmem:[%s3118_s3 + $0x388] sm:$0xff] }
  0xd7   :  { %v501_v58 = vpop.f32.mrf.mxu1  ;;  %v884_v57 = vld [vmem:[%s3118_s3 + $0x200] sm:$0xff]  ;;  %v994_v12 = vld [vmem:[%s3118_s3 + $0x570] sm:$0xff] }
  0xd8   :  { %v502_v2 = vadd.f32 %v501_v58, %v118_v54  ;;  %v798_v13 = vmul.f32 1.442695, %v431_v62  ;;  %v800_v21 = vmul.f32 1.442695, %v500_v4  ;;  %v900_v54 = vld [vmem:[%s3118_s3 + $0x280] sm:$0xff]  ;;  %v962_v4 = vld [vmem:[%s3118_s3 + $0x470] sm:$0xff] }
  0xd9   :  { %v916_v58 = vld [vmem:[%s3118_s3 + $0x300] sm:$0xff] }
  0xda   :  { %v802_v18 = vmul.f32 1.442695, %v502_v2  ;;  %1966 = vpow2.f32 %v798_v13  ;;  %v978_v2 = vld [vmem:[%s3118_s3 + $0x4f0] sm:$0xff]  ;;  %v977_v13 = vld [vmem:[%s3118_s3 + $0x4e8] sm:$0xff] }
  0xdc   :  { %v1959_v27 = vpop.eup %1958  ;;  %1968 = vpow2.f32 %v802_v18  ;;  %v976_v18 = vld [vmem:[%s3118_s3 + $0x4e0] sm:$0xff] }
  0xdd   :  { %v1961_v28 = vpop.eup %1960  ;;  %1970 = vpow2.f32 %v800_v21  ;;  %v960_v21 = vld [vmem:[%s3118_s3 + $0x460] sm:$0xff] }
  0xde   :  { %v1963_v29 = vpop.eup %1962  ;;  %1972 = vpow2.f32 %v796_v24 }
  0xdf   :  { %v1965_v31 = vpop.eup %1964  ;;  %1140 = vmatprep.mubr.f32.mxu0 %v1963_v29  ;;  %v922_v29 = vld [vmem:[%s3118_s3 + $0x330] sm:$0xff] }
  0xe0   :  { %1210 = vmatprep.mubr.f32.mxu1 %v1965_v31  ;;  %1141 = vmatmul.mubr.f32.vlgmr.msra.gmra.mxu0 %v1959_v27  ;;  %v938_v27 = vld [vmem:[%s3118_s3 + $0x3b0] sm:$0xff]  ;;  %v937_v31 = vld [vmem:[%s3118_s3 + $0x3a8] sm:$0xff] }
  0xe1   :  { %1211 = vmatmul.mubr.f32.vlgmr.msra.gmra.mxu1 %v1961_v28  ;;  %1747 = vmatpush3.msra.mxu0 %v899_v30  ;;  %v890_v28 = vld [vmem:[%s3118_s3 + $0x230] sm:$0xff]  ;;  %v905_v30 = vld [vmem:[%s3118_s3 + $0x2a8] sm:$0xff] }
  0xe2   :  { %1782 = vmatpush3.msra.mxu1 %v931_v32  ;;  %1748 = vmatprep.subr.mxu0 %v914_v33  ;;  %v889_v32 = vld [vmem:[%s3118_s3 + $0x228] sm:$0xff] }
  0xe3   :  { %1783 = vmatprep.subr.mxu1 %v946_v35  ;;  %1749 = vmatpush3.msra.mxu0 %v898_v36  ;;  %v921_v33 = vld [vmem:[%s3118_s3 + $0x328] sm:$0xff]  ;;  %v904_v35 = vld [vmem:[%s3118_s3 + $0x2a0] sm:$0xff] }
  0xe4   :  { %1784 = vmatpush3.msra.mxu1 %v930_v38  ;;  %1750 = vmatprep.subr.mxu0 %v913_v39  ;;  %v936_v36 = vld [vmem:[%s3118_s3 + $0x3a0] sm:$0xff]  ;;  %v903_v39 = vld [vmem:[%s3118_s3 + $0x298] sm:$0xff] }
  0xe5   :  { %1785 = vmatprep.subr.mxu1 %v945_v41  ;;  %1751 = vmatpush3.msra.mxu0 %v897_v42  ;;  %v920_v38 = vld [vmem:[%s3118_s3 + $0x320] sm:$0xff]  ;;  %v935_v41 = vld [vmem:[%s3118_s3 + $0x398] sm:$0xff] }
  0xe6   :  { %1786 = vmatpush3.msra.mxu1 %v929_v45  ;;  %1752 = vmatprep.subr.mxu0 %v912_v46  ;;  %v887_v42 = vld [vmem:[%s3118_s3 + $0x218] sm:$0xff]  ;;  %v902_v45 = vld [vmem:[%s3118_s3 + $0x290] sm:$0xff] }
  0xe7   :  { %1787 = vmatprep.subr.mxu1 %v944_v49  ;;  %1753 = vmatpush3.msra.mxu0 %v896_v50  ;;  %v934_v46 = vld [vmem:[%s3118_s3 + $0x390] sm:$0xff]  ;;  %v901_v50 = vld [vmem:[%s3118_s3 + $0x288] sm:$0xff] }
  0xe8   :  { %1788 = vmatpush3.msra.mxu1 %v928_v52  ;;  %1754 = vmatprep.subr.mxu0 %v911_v53  ;;  %v918_v49 = vld [vmem:[%s3118_s3 + $0x310] sm:$0xff]  ;;  %v885_v52 = vld [vmem:[%s3118_s3 + $0x208] sm:$0xff] }
  0xe9   :  { %1789 = vmatprep.subr.mxu1 %v943_v55  ;;  %1755 = vmatpush3.msra.mxu0 %v895_v56  ;;  %v917_v53 = vld [vmem:[%s3118_s3 + $0x308] sm:$0xff]  ;;  %v1967_v55 = vpop.eup %1966  ;;  %v932_v56 = vld [vmem:[%s3118_s3 + $0x380] sm:$0xff] }
  0xea   :  { %1790 = vmatpush3.msra.mxu1 %v927_v60  ;;  %1756 = vmatprep.subr.mxu0 %v910_v61  ;;  %v1969_v59 = vpop.eup %1968  ;;  %v979_v61 = vld [vmem:[%s3118_s3 + $0x4f8] sm:$0xff] }
  0xeb   :  { %1791 = vmatprep.subr.mxu1 %v942_v63  ;;  %1757 = vmatpush3.msra.mxu0 %v894_v0  ;;  %v1971_v60 = vpop.eup %1970  ;;  %v1011_v63 = vld [vmem:[%s3118_s3 + $0x5f8] sm:$0xff] }
  0xec   :  { %1792 = vmatpush3.msra.mxu1 %v926_v1  ;;  %1758 = vmatprep.subr.mxu0 %v909_v3  ;;  %v1973_v62 = vpop.eup %1972  ;;  %v963_v0 = vld [vmem:[%s3118_s3 + $0x478] sm:$0xff]  ;;  %v1010_v3 = vld [vmem:[%s3118_s3 + $0x5f0] sm:$0xff] }
  0xed   :  { %1793 = vmatprep.subr.mxu1 %v941_v8  ;;  %1759 = vmatpush3.msra.mxu0 %v893_v11  ;;  %v995_v1 = vld [vmem:[%s3118_s3 + $0x578] sm:$0xff]  ;;  %v2723_v8 = vld [vmem:[%s3117_s2 + $0x8] sm:$0xff]  ;;  %v570_v11 = vpop.f32.mrf.mxu0 }
  0xee   :  { %1794 = vmatpush3.msra.mxu1 %v925_v14  ;;  %1760 = vmatprep.subr.mxu0 %v908_v15  ;;  %v1009_v14 = vld [vmem:[%s3118_s3 + $0x5e8] sm:$0xff]  ;;  %v134_v24 = vrot.slane %v2723_v8, %v101_v10  ;;  %v122_v10 = vrot.slane %v2723_v8, %v89_v6  ;;  %v990_v6 = vld [vmem:[%s3118_s3 + $0x550] sm:$0xff] }
  0xef   :  { %1795 = vmatprep.subr.mxu1 %v940_v16  ;;  %1761 = vmatpush3.msra.mxu0 %v892_v17  ;;  %v961_v15 = vld [vmem:[%s3118_s3 + $0x468] sm:$0xff]  ;;  %v641_v16 = vpop.f32.mrf.mxu1 }
  0xf0   :  { %1796 = vmatpush3.msra.mxu1 %v924_v19  ;;  %1762 = vmatprep.subr.mxu0 %v907_v20  ;;  %v993_v17 = vld [vmem:[%s3118_s3 + $0x568] sm:$0xff]  ;;  %v126_v19 = vrot.slane %v2723_v8, %v93_v9  ;;  %v1008_v20 = vld [vmem:[%s3118_s3 + $0x5e0] sm:$0xff]  ;;  %v975_v9 = vld [vmem:[%s3118_s3 + $0x4d8] sm:$0xff] }
  0xf1   :  { %1797 = vmatprep.subr.mxu1 %v939_v22  ;;  %1763 = vmatpush3.msra.mxu0 %v891_v23  ;;  %v572_v22 = vpop.f32.mrf.mxu0  ;;  %v992_v23 = vld [vmem:[%s3118_s3 + $0x560] sm:$0xff] }
  0xf2   :  { %1798 = vmatpush3.msra.mxu1 %v923_v25  ;;  %1764 = vmatprep.subr.mxu0 %v906_v26  ;;  %v1007_v25 = vld [vmem:[%s3118_s3 + $0x5d8] sm:$0xff] }
  0xf3   :  { %1799 = vmatprep.subr.mxu1 %v938_v27  ;;  %1765 = vmatpush3.msra.mxu0 %v890_v28  ;;  %v959_v26 = vld [vmem:[%s3118_s3 + $0x458] sm:$0xff]  ;;  %v130_v27 = vrot.slane %v2723_v8, %v97_v7  ;;  %v643_v28 = vpop.f32.mrf.mxu1  ;;  %v1006_v7 = vld [vmem:[%s3118_s3 + $0x5d0] sm:$0xff] }
  0xf4   :  { %1800 = vmatpush3.msra.mxu1 %v922_v29  ;;  %1766 = vmatprep.subr.mxu0 %v905_v30  ;;  %v991_v29 = vld [vmem:[%s3118_s3 + $0x558] sm:$0xff]  ;;  %v974_v30 = vld [vmem:[%s3118_s3 + $0x4d0] sm:$0xff] }
  0xf5   :  { %1801 = vmatprep.subr.mxu1 %v937_v31  ;;  %1767 = vmatpush3.msra.mxu0 %v889_v32  ;;  %v573_v31 = vadd.f32 %v572_v22, %v126_v19  ;;  %v958_v32 = vld [vmem:[%s3118_s3 + $0x450] sm:$0xff]  ;;  %v997_v19 = vld [vmem:[%s3118_s3 + $0x588] sm:$0xff]  ;;  %v964_v22 = vld [vmem:[%s3118_s3 + $0x480] sm:$0xff] }
  0xf6   :  { %1802 = vmatpush3.msra.mxu1 %v921_v33  ;;  %1768 = vmatprep.subr.mxu0 %v904_v35  ;;  %v644_v33 = vadd.f32 %v643_v28, %v134_v24  ;;  %v973_v35 = vld [vmem:[%s3118_s3 + $0x4c8] sm:$0xff]  ;;  %v948_v24 = vld [vmem:[%s3118_s3 + $0x400] sm:$0xff]  ;;  %v1043_v28 = vld [vmem:[%s3118_s3 + $0x6f8] sm:$0xff] }
  0xf7   :  { %1803 = vmatprep.subr.mxu1 %v936_v36  ;;  %1769 = vmatpush3.msra.mxu0 %v888_v37  ;;  %v642_v36 = vadd.f32 %v641_v16, %v130_v27  ;;  %v1005_v37 = vld [vmem:[%s3118_s3 + $0x5c8] sm:$0xff]  ;;  %v950_v16 = vld [vmem:[%s3118_s3 + $0x410] sm:$0xff] }
  0xf8   :  { %1804 = vmatpush3.msra.mxu1 %v920_v38  ;;  %1770 = vmatprep.subr.mxu0 %v903_v39  ;;  %v957_v38 = vld [vmem:[%s3118_s3 + $0x448] sm:$0xff]  ;;  %v571_v39 = vadd.f32 %v570_v11, %v122_v10  ;;  %v999_v11 = vld [vmem:[%s3118_s3 + $0x598] sm:$0xff] }
  0xf9   :  { %1805 = vmatprep.subr.mxu1 %v935_v41  ;;  %1771 = vmatpush3.msra.mxu0 %v887_v42  ;;  %v806_v41 = vmul.f32 1.442695, %v573_v31  ;;  %v989_v42 = vld [vmem:[%s3118_s3 + $0x548] sm:$0xff]  ;;  %v1059_v31 = vld [vmem:[%s3118_s3 + $0x778] sm:$0xff] }
  0xfa   :  { %1806 = vmatpush3.msra.mxu1 %v919_v44  ;;  %1772 = vmatprep.subr.mxu0 %v902_v45  ;;  %v972_v44 = vld [vmem:[%s3118_s3 + $0x4c0] sm:$0xff] }
  0xfb   :  { %1807 = vmatprep.subr.mxu1 %v934_v46  ;;  %1773 = vmatpush3.msra.mxu0 %v886_v48  ;;  %v1004_v45 = vld [vmem:[%s3118_s3 + $0x5c0] sm:$0xff]  ;;  %v810_v48 = vmul.f32 1.442695, %v644_v33  ;;  %1974 = vpow2.f32 %v806_v41  ;;  %v1026_v33 = vld [vmem:[%s3118_s3 + $0x670] sm:$0xff]  ;;  %v783_v41 = vpop.f32.mrf.mxu1 }
  0xfc   :  { %1808 = vmatpush3.msra.mxu1 %v918_v49  ;;  %1774 = vmatprep.subr.mxu0 %v901_v50  ;;  %v956_v46 = vld [vmem:[%s3118_s3 + $0x440] sm:$0xff]  ;;  %v971_v50 = vld [vmem:[%s3118_s3 + $0x4b8] sm:$0xff] }
  0xfd   :  { %1809 = vmatprep.subr.mxu1 %v933_v51  ;;  %1775 = vmatpush3.msra.mxu0 %v885_v52  ;;  %v988_v49 = vld [vmem:[%s3118_s3 + $0x540] sm:$0xff]  ;;  %v808_v51 = vmul.f32 1.442695, %v642_v36  ;;  %v1003_v52 = vld [vmem:[%s3118_s3 + $0x5b8] sm:$0xff]  ;;  %1976 = vpow2.f32 %v810_v48  ;;  %v1041_v36 = vld [vmem:[%s3118_s3 + $0x6e8] sm:$0xff] }
  0xfe   :  { %1810 = vmatpush3.msra.mxu1 %v917_v53  ;;  %1776 = vmatprep.subr.mxu0 %v900_v54  ;;  %v955_v53 = vld [vmem:[%s3118_s3 + $0x438] sm:$0xff]  ;;  %v804_v54 = vmul.f32 1.442695, %v571_v39  ;;  %v142_v39 = vrot.slane %v2723_v8, %v109_v34  ;;  %v1024_v34 = vld [vmem:[%s3118_s3 + $0x660] sm:$0xff] }
  0xff   :  { %1280 = vmatprep.mubr.f32.mxu0 %v1967_v55  ;;  %1811 = vmatprep.subr.mxu1 %v932_v56  ;;  %v987_v55 = vld [vmem:[%s3118_s3 + $0x538] sm:$0xff]  ;;  %v970_v56 = vld [vmem:[%s3118_s3 + $0x4b0] sm:$0xff]  ;;  %1978 = vpow2.f32 %v808_v51  ;;  %v1056_v48 = vld [vmem:[%s3118_s3 + $0x760] sm:$0xff] }
 0x100   :  { %1777 = vmatpush3.msra.mxu0 %v884_v57  ;;  %1812 = vmatpush3.msra.mxu1 %v916_v58  ;;  %v1002_v57 = vld [vmem:[%s3118_s3 + $0x5b0] sm:$0xff]  ;;  %1980 = vpow2.f32 %v804_v54  ;;  %v1071_v51 = vld [vmem:[%s3118_s3 + $0x7d8] sm:$0xff]  ;;  %v146_v54 = vrot.slane %v2723_v8, %v113_v43 }
 0x101   :  { %1350 = vmatprep.mubr.f32.mxu1 %v1969_v59  ;;  %1281 = vmatmul.mubr.f32.vlgmr.msra.gmra.mxu0 %v1973_v62  ;;  %v954_v58 = vld [vmem:[%s3118_s3 + $0x430] sm:$0xff]  ;;  %v953_v62 = vld [vmem:[%s3118_s3 + $0x428] sm:$0xff] }
 0x102   :  { %1351 = vmatmul.mubr.f32.vlgmr.msra.gmra.mxu1 %v1971_v60  ;;  %1816 = vmatprep.subr.mxu0 %v979_v61  ;;  %v986_v59 = vld [vmem:[%s3118_s3 + $0x530] sm:$0xff]  ;;  %v969_v60 = vld [vmem:[%s3118_s3 + $0x4a8] sm:$0xff] }
 0x103   :  { %1851 = vmatprep.subr.mxu1 %v1011_v63  ;;  %1817 = vmatpush3.msra.mxu0 %v963_v0  ;;  %v1001_v61 = vld [vmem:[%s3118_s3 + $0x5a8] sm:$0xff]  ;;  %v968_v0 = vld [vmem:[%s3118_s3 + $0x4a0] sm:$0xff]  ;;  %v1070_v43 = vld [vmem:[%s3118_s3 + $0x7d0] sm:$0xff] }
 0x104   :  { %1852 = vmatpush3.msra.mxu1 %v995_v1  ;;  %1818 = vmatprep.subr.mxu0 %v978_v2  ;;  %v985_v63 = vld [vmem:[%s3118_s3 + $0x528] sm:$0xff]  ;;  %v1000_v1 = vld [vmem:[%s3118_s3 + $0x5a0] sm:$0xff] }
 0x105   :  { %1853 = vmatprep.subr.mxu1 %v1010_v3  ;;  %1819 = vmatpush3.msra.mxu0 %v962_v4  ;;  %v952_v2 = vld [vmem:[%s3118_s3 + $0x420] sm:$0xff]  ;;  %v967_v4 = vld [vmem:[%s3118_s3 + $0x498] sm:$0xff] }
 0x106   :  { %1854 = vmatpush3.msra.mxu1 %v994_v12  ;;  %1820 = vmatprep.subr.mxu0 %v977_v13  ;;  %v984_v3 = vld [vmem:[%s3118_s3 + $0x520] sm:$0xff]  ;;  %v951_v12 = vld [vmem:[%s3118_s3 + $0x418] sm:$0xff] }
 0x107   :  { %1855 = vmatprep.subr.mxu1 %v1009_v14  ;;  %1821 = vmatpush3.msra.mxu0 %v961_v15  ;;  %v983_v13 = vld [vmem:[%s3118_s3 + $0x518] sm:$0xff]  ;;  %v966_v14 = vld [vmem:[%s3118_s3 + $0x490] sm:$0xff] }
 0x108   :  { %1856 = vmatpush3.msra.mxu1 %v993_v17  ;;  %1822 = vmatprep.subr.mxu0 %v976_v18  ;;  %v998_v15 = vld [vmem:[%s3118_s3 + $0x590] sm:$0xff]  ;;  %v965_v18 = vld [vmem:[%s3118_s3 + $0x488] sm:$0xff] }
 0x109   :  { %1857 = vmatprep.subr.mxu1 %v1008_v20  ;;  %1823 = vmatpush3.msra.mxu0 %v960_v21  ;;  %v982_v17 = vld [vmem:[%s3118_s3 + $0x510] sm:$0xff]  ;;  %v949_v20 = vld [vmem:[%s3118_s3 + $0x408] sm:$0xff] }
 0x10a   :  { %1858 = vmatpush3.msra.mxu1 %v992_v23  ;;  %1824 = vmatprep.subr.mxu0 %v975_v9  ;;  %v981_v21 = vld [vmem:[%s3118_s3 + $0x508] sm:$0xff]  ;;  %v1975_v23 = vpop.eup %1974  ;;  %v996_v9 = vld [vmem:[%s3118_s3 + $0x580] sm:$0xff] }
 0x10b   :  { %1859 = vmatprep.subr.mxu1 %v1007_v25  ;;  %1825 = vmatpush3.msra.mxu0 %v959_v26  ;;  %v980_v25 = vld [vmem:[%s3118_s3 + $0x500] sm:$0xff]  ;;  %v1977_v26 = vpop.eup %1976 }
 0x10c   :  { %1860 = vmatpush3.msra.mxu1 %v991_v29  ;;  %1826 = vmatprep.subr.mxu0 %v974_v30  ;;  %v1979_v27 = vpop.eup %1978  ;;  %v1075_v29 = vld [vmem:[%s3118_s3 + $0x7f8] sm:$0xff] }
 0x10d   :  { %1861 = vmatprep.subr.mxu1 %v1006_v7  ;;  %1827 = vmatpush3.msra.mxu0 %v958_v32  ;;  %v1981_v10 = vpop.eup %1980  ;;  %v1027_v30 = vld [vmem:[%s3118_s3 + $0x678] sm:$0xff]  ;;  %v1042_v7 = vld [vmem:[%s3118_s3 + $0x6f0] sm:$0xff]  ;;  %v712_v32 = vpop.f32.mrf.mxu0 }
 0x10e   :  { %1862 = vmatpush3.msra.mxu1 %v990_v6  ;;  %1828 = vmatprep.subr.mxu0 %v973_v35  ;;  %v1074_v6 = vld [vmem:[%s3118_s3 + $0x7f0] sm:$0xff] }
 0x10f   :  { %1863 = vmatprep.subr.mxu1 %v1005_v37  ;;  %1829 = vmatpush3.msra.mxu0 %v957_v38  ;;  %v1058_v35 = vld [vmem:[%s3118_s3 + $0x770] sm:$0xff]  ;;  %v1073_v37 = vld [vmem:[%s3118_s3 + $0x7e8] sm:$0xff] }
 0x110   :  { %1864 = vmatpush3.msra.mxu1 %v989_v42  ;;  %1830 = vmatprep.subr.mxu0 %v972_v44  ;;  %v1025_v38 = vld [vmem:[%s3118_s3 + $0x668] sm:$0xff]  ;;  %v1040_v44 = vld [vmem:[%s3118_s3 + $0x6e0] sm:$0xff] }
 0x111   :  { %1865 = vmatprep.subr.mxu1 %v1004_v45  ;;  %1831 = vmatpush3.msra.mxu0 %v956_v46  ;;  %v1057_v42 = vld [vmem:[%s3118_s3 + $0x768] sm:$0xff]  ;;  %v714_v45 = vpop.f32.mrf.mxu0  ;;  %v1072_v46 = vld [vmem:[%s3118_s3 + $0x7e0] sm:$0xff] }
 0x112   :  { %1866 = vmatpush3.msra.mxu1 %v988_v49  ;;  %1832 = vmatprep.subr.mxu0 %v971_v50  ;;  %v1039_v49 = vld [vmem:[%s3118_s3 + $0x6d8] sm:$0xff]  ;;  %v150_v50 = vrot.slane %v2723_v8, %v117_v40  ;;  %v138_v40 = vrot.slane %v2723_v8, %v105_v47  ;;  %v1054_v47 = vld [vmem:[%s3118_s3 + $0x750] sm:$0xff] }
 0x113   :  { %1867 = vmatprep.subr.mxu1 %v1003_v52  ;;  %1833 = vmatpush3.msra.mxu0 %v955_v53  ;;  %v1023_v52 = vld [vmem:[%s3118_s3 + $0x658] sm:$0xff]  ;;  %v715_v53 = vadd.f32 %v714_v45, %v142_v39  ;;  %v1045_v39 = vld [vmem:[%s3118_s3 + $0x708] sm:$0xff]  ;;  %v1044_v45 = vld [vmem:[%s3118_s3 + $0x700] sm:$0xff] }
 0x114   :  { %1868 = vmatpush3.msra.mxu1 %v987_v55  ;;  %1834 = vmatprep.subr.mxu0 %v970_v56  ;;  %v785_v55 = vpop.f32.mrf.mxu1  ;;  %v1055_v56 = vld [vmem:[%s3118_s3 + $0x758] sm:$0xff] }
 0x115   :  { %1869 = vmatprep.subr.mxu1 %v1002_v57  ;;  %1835 = vmatpush3.msra.mxu0 %v954_v58  ;;  %v1038_v57 = vld [vmem:[%s3118_s3 + $0x6d0] sm:$0xff]  ;;  %v786_v8 = vadd.f32 %v785_v55, %v150_v50  ;;  %v1037_v58 = vld [vmem:[%s3118_s3 + $0x6c8] sm:$0xff] }
 0x116   :  { %1870 = vmatpush3.msra.mxu1 %v986_v59  ;;  %1836 = vmatprep.subr.mxu0 %v969_v60  ;;  %v814_v59 = vmul.f32 1.442695, %v715_v53  ;;  %v784_v60 = vadd.f32 %v783_v41, %v146_v54  ;;  %v1028_v41 = vld [vmem:[%s3118_s3 + $0x680] sm:$0xff] }
 0x117   :  { %1871 = vmatprep.subr.mxu1 %v1001_v61  ;;  %1837 = vmatpush3.msra.mxu0 %v953_v62  ;;  %v1069_v61 = vld [vmem:[%s3118_s3 + $0x7c8] sm:$0xff] }
 0x118   :  { %1872 = vmatpush3.msra.mxu1 %v985_v63  ;;  %1838 = vmatprep.subr.mxu0 %v968_v0  ;;  %v1021_v62 = vld [vmem:[%s3118_s3 + $0x648] sm:$0xff]  ;;  %v713_v63 = vadd.f32 %v712_v32, %v138_v40  ;;  %1982 = vpow2.f32 %v814_v59  ;;  %v1062_v32 = vld [vmem:[%s3118_s3 + $0x790] sm:$0xff] }
 0x119   :  { %1873 = vmatprep.subr.mxu1 %v1000_v1  ;;  %1839 = vmatpush3.msra.mxu0 %v952_v2  ;;  %v1053_v0 = vld [vmem:[%s3118_s3 + $0x748] sm:$0xff]  ;;  %v1036_v1 = vld [vmem:[%s3118_s3 + $0x6c0] sm:$0xff] }
 0x11a   :  { %1874 = vmatpush3.msra.mxu1 %v984_v3  ;;  %1840 = vmatprep.subr.mxu0 %v967_v4  ;;  %v1068_v2 = vld [vmem:[%s3118_s3 + $0x7c0] sm:$0xff]  ;;  %v818_v4 = vmul.f32 1.442695, %v786_v8 }
 0x11b   :  { %1875 = vmatprep.subr.mxu1 %v999_v11  ;;  %1841 = vmatpush3.msra.mxu0 %v951_v12  ;;  %v1020_v3 = vld [vmem:[%s3118_s3 + $0x640] sm:$0xff]  ;;  %v1035_v12 = vld [vmem:[%s3118_s3 + $0x6b8] sm:$0xff] }
 0x11c   :  { %1876 = vmatpush3.msra.mxu1 %v983_v13  ;;  %1842 = vmatprep.subr.mxu0 %v966_v14  ;;  %v1052_v11 = vld [vmem:[%s3118_s3 + $0x740] sm:$0xff]  ;;  %v816_v13 = vmul.f32 1.442695, %v784_v60  ;;  %v1067_v14 = vld [vmem:[%s3118_s3 + $0x7b8] sm:$0xff]  ;;  %1984 = vpow2.f32 %v818_v4 }
 0x11d   :  { %1877 = vmatprep.subr.mxu1 %v998_v15  ;;  %1843 = vmatpush3.msra.mxu0 %v950_v16  ;;  %v1019_v15 = vld [vmem:[%s3118_s3 + $0x638] sm:$0xff]  ;;  %v812_v16 = vmul.f32 1.442695, %v713_v63 }
 0x11e   :  { %1878 = vmatpush3.msra.mxu1 %v982_v17  ;;  %1844 = vmatprep.subr.mxu0 %v965_v18  ;;  %v1051_v17 = vld [vmem:[%s3118_s3 + $0x738] sm:$0xff]  ;;  %v1034_v18 = vld [vmem:[%s3118_s3 + $0x6b0] sm:$0xff]  ;;  %1986 = vpow2.f32 %v816_v13 }
 0x11f   :  { %1879 = vmatprep.subr.mxu1 %v997_v19  ;;  %1845 = vmatpush3.msra.mxu0 %v949_v20  ;;  %v1066_v19 = vld [vmem:[%s3118_s3 + $0x7b0] sm:$0xff]  ;;  %1988 = vpow2.f32 %v812_v16 }
 0x120   :  { %1880 = vmatpush3.msra.mxu1 %v981_v21  ;;  %1846 = vmatprep.subr.mxu0 %v964_v22  ;;  %v1018_v20 = vld [vmem:[%s3118_s3 + $0x630] sm:$0xff]  ;;  %v1033_v22 = vld [vmem:[%s3118_s3 + $0x6a8] sm:$0xff] }
 0x121   :  { %1420 = vmatprep.mubr.f32.mxu0 %v1975_v23  ;;  %1881 = vmatprep.subr.mxu1 %v996_v9  ;;  %v1050_v21 = vld [vmem:[%s3118_s3 + $0x730] sm:$0xff]  ;;  %v1065_v23 = vld [vmem:[%s3118_s3 + $0x7a8] sm:$0xff] }
 0x122   :  { %1847 = vmatpush3.msra.mxu0 %v948_v24  ;;  %1882 = vmatpush3.msra.mxu1 %v980_v25  ;;  %v1017_v9 = vld [vmem:[%s3118_s3 + $0x628] sm:$0xff]  ;;  %v1032_v25 = vld [vmem:[%s3118_s3 + $0x6a0] sm:$0xff] }
 0x123   :  { %1490 = vmatprep.mubr.f32.mxu1 %v1977_v26  ;;  %1421 = vmatmul.mubr.f32.vlgmr.msra.gmra.mxu0 %v1981_v10  ;;  %v1049_v24 = vld [vmem:[%s3118_s3 + $0x728] sm:$0xff]  ;;  %v1064_v26 = vld [vmem:[%s3118_s3 + $0x7a0] sm:$0xff]  ;;  %v1031_v10 = vld [vmem:[%s3118_s3 + $0x698] sm:$0xff] }
 0x124   :  { %1491 = vmatmul.mubr.f32.vlgmr.msra.gmra.mxu1 %v1979_v27  ;;  %1886 = vmatprep.subr.mxu0 %v1043_v28  ;;  %v1016_v27 = vld [vmem:[%s3118_s3 + $0x620] sm:$0xff] }
 0x125   :  { %1921 = vmatprep.subr.mxu1 %v1075_v29  ;;  %1887 = vmatpush3.msra.mxu0 %v1027_v30  ;;  %v1048_v28 = vld [vmem:[%s3118_s3 + $0x720] sm:$0xff]  ;;  %v1063_v29 = vld [vmem:[%s3118_s3 + $0x798] sm:$0xff] }
 0x126   :  { %1922 = vmatpush3.msra.mxu1 %v1059_v31  ;;  %1888 = vmatprep.subr.mxu0 %v1042_v7  ;;  %v1015_v30 = vld [vmem:[%s3118_s3 + $0x618] sm:$0xff]  ;;  %v1030_v7 = vld [vmem:[%s3118_s3 + $0x690] sm:$0xff] }
 0x127   :  { %1923 = vmatprep.subr.mxu1 %v1074_v6  ;;  %1889 = vmatpush3.msra.mxu0 %v1026_v33  ;;  %v1047_v31 = vld [vmem:[%s3118_s3 + $0x718] sm:$0xff]  ;;  %v1014_v6 = vld [vmem:[%s3118_s3 + $0x610] sm:$0xff] }
 0x128   :  { %1924 = vmatpush3.msra.mxu1 %v1058_v35  ;;  %1890 = vmatprep.subr.mxu0 %v1041_v36  ;;  %v1046_v33 = vld [vmem:[%s3118_s3 + $0x710] sm:$0xff]  ;;  %v1029_v35 = vld [vmem:[%s3118_s3 + $0x688] sm:$0xff] }
 0x129   :  { %1925 = vmatprep.subr.mxu1 %v1073_v37  ;;  %1891 = vmatpush3.msra.mxu0 %v1025_v38  ;;  %v1061_v36 = vld [vmem:[%s3118_s3 + $0x788] sm:$0xff]  ;;  %v1983_v38 = vpop.eup %1982 }
 0x12a   :  { %1926 = vmatpush3.msra.mxu1 %v1057_v42  ;;  %1892 = vmatprep.subr.mxu0 %v1040_v44  ;;  %v1013_v37 = vld [vmem:[%s3118_s3 + $0x608] sm:$0xff]  ;;  %v1060_v42 = vld [vmem:[%s3118_s3 + $0x780] sm:$0xff] }
 0x12b   :  { %1927 = vmatprep.subr.mxu1 %v1072_v46  ;;  %1893 = vmatpush3.msra.mxu0 %v1024_v34  ;;  %v1012_v44 = vld [vmem:[%s3118_s3 + $0x600] sm:$0xff]  ;;  %v1985_v46 = vpop.eup %1984  ;;  %s2013_s3 = smov [#allocation2]  }
 0x12c   :  { %1928 = vmatpush3.msra.mxu1 %v1056_v48  ;;  %1894 = vmatprep.subr.mxu0 %v1039_v49  ;;  %v1987_v34 = vpop.eup %1986  ;;  %s1644_s14 = sshll.u32 %s2013_s3, 4  ;;  %s1645_s14 = int_to_ptr.vmem [resolvable:$true] %s1644_s14 }
 0x12d   :  { %1929 = vmatprep.subr.mxu1 %v1071_v51  ;;  %1895 = vmatpush3.msra.mxu0 %v1023_v52  ;;  %v1989_v48 = vpop.eup %1988  ;;  %s1990_s15 = scalar_lea.vmem %s1645_s14, 16  ;;  %s1994_s16 = scalar_lea.vmem %s1645_s14, 32 }
 0x12e   :  { %1930 = vmatpush3.msra.mxu1 %v1055_v56  ;;  %1896 = vmatprep.subr.mxu0 %v1038_v57  ;;  %p1991_p0 = scmp.ne.s32.totalorder %s1645_s14, %s1990_s15  ;;  %p1995_p1 = scmp.lt.s32.totalorder %s1645_s14, %s1645_s14 }
 0x12f   :  { %1931 = vmatprep.subr.mxu1 %v1070_v43  ;;  %1897 = vmatpush3.msra.mxu0 %v1022_v5  ;;  %p1996_p2 = scmp.lt.s32.totalorder %s1994_s16, %s1990_s15 }
 0x130   :  { %1932 = vmatpush3.msra.mxu1 %v1054_v47  ;;  %1898 = vmatprep.subr.mxu0 %v1037_v58 }
 0x131   :  { %1933 = vmatprep.subr.mxu1 %v1069_v61  ;;  %1899 = vmatpush3.msra.mxu0 %v1021_v62  ;;  %p1997_p3 = por %p1996_p2, %p1995_p1 }
 0x132   :  { %1934 = vmatpush3.msra.mxu1 %v1053_v0  ;;  %1900 = vmatprep.subr.mxu0 %v1036_v1 }
 0x133   :  { %1935 = vmatprep.subr.mxu1 %v1068_v2  ;;  %1901 = vmatpush3.msra.mxu0 %v1020_v3  ;;  %p1998_p4 = pnand %p1997_p3, %p1991_p0 }
 0x134   :  { %1936 = vmatpush3.msra.mxu1 %v1052_v11  ;;  %1902 = vmatprep.subr.mxu0 %v1035_v12 }
 0x135   :  { %1937 = vmatprep.subr.mxu1 %v1067_v14  ;;  %1903 = vmatpush3.msra.mxu0 %v1019_v15 }
 0x136   :  { %1938 = vmatpush3.msra.mxu1 %v1051_v17  ;;  %1904 = vmatprep.subr.mxu0 %v1034_v18 }
 0x137   :  { %1939 = vmatprep.subr.mxu1 %v1066_v19  ;;  %1905 = vmatpush3.msra.mxu0 %v1018_v20 }
 0x138   :  { %1940 = vmatpush3.msra.mxu1 %v1050_v21  ;;  %1906 = vmatprep.subr.mxu0 %v1033_v22 }
 0x139   :  { %1941 = vmatprep.subr.mxu1 %v1065_v23  ;;  %1907 = vmatpush3.msra.mxu0 %v1017_v9 }
 0x13a   :  { %1942 = vmatpush3.msra.mxu1 %v1049_v24  ;;  %1908 = vmatprep.subr.mxu0 %v1032_v25 }
 0x13b   :  { %1943 = vmatprep.subr.mxu1 %v1064_v26  ;;  %1909 = vmatpush3.msra.mxu0 %v1016_v27 }
 0x13c   :  { %1944 = vmatpush3.msra.mxu1 %v1048_v28  ;;  %1910 = vmatprep.subr.mxu0 %v1031_v10 }
 0x13d   :  { %1945 = vmatprep.subr.mxu1 %v1063_v29  ;;  %1911 = vmatpush3.msra.mxu0 %v1015_v30 }
 0x13e   :  { %1946 = vmatpush3.msra.mxu1 %v1047_v31  ;;  %1912 = vmatprep.subr.mxu0 %v1030_v7 }
 0x13f   :  { %1947 = vmatprep.subr.mxu1 %v1062_v32  ;;  %1913 = vmatpush3.msra.mxu0 %v1014_v6 }
 0x140   :  { %1948 = vmatpush3.msra.mxu1 %v1046_v33  ;;  %1914 = vmatprep.subr.mxu0 %v1029_v35 }
 0x141   :  { %1949 = vmatprep.subr.mxu1 %v1061_v36  ;;  %1915 = vmatpush3.msra.mxu0 %v1013_v37 }
 0x142   :  { %1560 = vmatprep.mubr.f32.mxu0 %v1983_v38  ;;  %1950 = vmatpush3.msra.mxu1 %v1045_v39 }
 0x143   :  { %1916 = vmatprep.subr.mxu0 %v1028_v41  ;;  %1951 = vmatprep.subr.mxu1 %v1060_v42 }
 0x144   :  { %1917 = vmatpush3.msra.mxu0 %v1012_v44  ;;  %1952 = vmatpush3.msra.mxu1 %v1044_v45 }
 0x145   :  { %1630 = vmatprep.mubr.f32.mxu1 %v1985_v46  ;;  %1561 = vmatmul.mubr.f32.vlgmr.msra.gmra.mxu0 %v1989_v48 }
 0x146   :  { %1631 = vmatmul.mubr.f32.vlgmr.msra.gmra.mxu1 %v1987_v34 }
 0x1a0   :  { %v1708_v49 = vpop.f32.mrf.mxu0 }
 0x1a1   :  { %v1743_v50 = vpop.f32.mrf.mxu1 }
 0x1a2   :  { %v1709_v51 = vpop.f32.mrf.mxu0 }
 0x1a3   :  { %v1744_v53 = vpop.f32.mrf.mxu1  ;;  %v1710_v55 = vadd.f32 %v1709_v51, %v1708_v49 }
 0x1a4   :  { %v1745_v40 = vadd.f32 %v1744_v53, %v1743_v50 }
 0x1a6   :  { %v1213_v5 = vadd.f32 %v1745_v40, %v1710_v55 }
 0x1c1   :  { %v1778_v52 = vpop.f32.mrf.mxu0 }
 0x1c2   :  { %v1813_v56 = vpop.f32.mrf.mxu1 }
 0x1c3   :  { %v1779_v54 = vpop.f32.mrf.mxu0 }
 0x1c4   :  { %v1780_v43 = vadd.f32 %v1779_v54, %v1778_v52  ;;  %v1814_v47 = vpop.f32.mrf.mxu1 }
 0x1c5   :  { %v1815_v60 = vadd.f32 %v1814_v47, %v1813_v56 }
 0x1c6   :  { %v1283_v58 = vadd.f32 %v1780_v43, %v1213_v5 }
 0x1c8   :  { %v1353_v62 = vadd.f32 %v1815_v60, %v1283_v58 }
 0x1e3   :  { %v1848_v57 = vpop.f32.mrf.mxu0 }
 0x1e4   :  { %v1883_v59 = vpop.f32.mrf.mxu1 }
 0x1e5   :  { %v1849_v8 = vpop.f32.mrf.mxu0 }
 0x1e6   :  { %v1850_v61 = vadd.f32 %v1849_v8, %v1848_v57  ;;  %v1884_v63 = vpop.f32.mrf.mxu1 }
 0x1e7   :  { %v1885_v2 = vadd.f32 %v1884_v63, %v1883_v59 }
 0x1e8   :  { %v1423_v0 = vadd.f32 %v1850_v61, %v1353_v62 }
 0x1ea   :  { %v1493_v11 = vadd.f32 %v1885_v2, %v1423_v0 }
 0x205   :  { %v1918_v1 = vpop.f32.mrf.mxu0 }
 0x206   :  { %v1953_v3 = vpop.f32.mrf.mxu1 }
 0x207   :  { %v1919_v4 = vpop.f32.mrf.mxu0 }
 0x208   :  { %v1920_v12 = vadd.f32 %v1919_v4, %v1918_v1  ;;  %v1954_v13 = vpop.f32.mrf.mxu1 }
 0x209   :  { %v1955_v15 = vadd.f32 %v1954_v13, %v1953_v3 }
 0x20a   :  { %v1563_v14 = vadd.f32 %v1920_v12, %v1493_v11 }
 0x20c   :  { %v1633_v16 = vadd.f32 %v1955_v15, %v1563_v14 }
 0x20e   :  { %1637 = vst.msk [vmem:[#allocation2] sm:$0x1] %vm1636_vm2, %v1633_v16 }
 0x20f   :  { %2001 = shalt.err (!%p1998_p4)
}
 0x210   :  { %1647 = dma.vmem_to_hbm [thread:$0]  %s1645_s14, 16, %s3119_s4, [#allocation3]  }
 0x211   :  { %2010 = dma.done.wait [#allocation3], 16  }
 0x212   :  { %2011 = vsyncadd [#allocation3], 4294967280 }
 0x213   :  { %1651 = vsyncpa [#allocation3], 1 }

</bundles_post_ra>
